<compile_context>
chip_gen: v7x
topology: tpu7x:2x2x1
jax: 0.10.0
libtpu: 0.0.40
codegen_flags: <defaults>
</compile_context>

<pallas_src>
import functools

import jax
import jax.numpy as jnp
from jax import lax
from jax.experimental import pallas as pl
from jax.experimental.pallas import tpu as pltpu

# ---------------- config (small, consistent with the module) ----------------
BATCH = 2
SEQ = 8
HIDDEN = 32
KSIZE = 3
PAD = (KSIZE - 1) // 2
NUM_LAYERS = 2
LN_EPS = 1e-5


# ------------------------------ Pallas kernel -------------------------------
def _stack_kernel(x_ref, wconv_ref, wff_ref, vec_ref, o_ref,
                  *, num_layers, ksize, pad, seq):
    """Whole StackGatedCNN forward, all layers unrolled, single invocation.

    x_ref     : (B*S, H)          activation (batches stacked along rows)
    wconv_ref : (L, 2K, H, H)     taps 0..K-1 = value conv, K..2K-1 = gate conv
                                  (each is PyTorch conv weight[:, :, k].T)
    wff_ref   : (L, 2, H, H)      [W1, W2]
    vec_ref   : (L, 8, H)         rows: g1, be1, b1, b2, g2, be2, 0, 0
    """
    xf = x_ref[...].astype(jnp.float32)                      # (BS, H)
    BS, H = xf.shape

    # Conv boundary masks: one per nonzero tap shift, computed ONCE for the whole
    # kernel.  Taps must not read across the zero-padding / batch boundary
    # (rows are batch-major: row = b*S + t, so position-in-sequence = row % S).
    rows_mod = lax.broadcasted_iota(jnp.int32, (BS, H), 0) % seq
    tap_mask = {}
    for dk in range(ksize):
        s = dk - pad
        if s != 0:
            tap_mask[dk] = (rows_mod + s >= 0) & (rows_mod + s < seq)

    for layer in range(num_layers):
        # ---- gated conv: K accumulating (BS,H)@(H,H) MXU matmuls per branch ----
        shifted = []
        for dk in range(ksize):
            s = dk - pad                                     # xs[t] = x[t + s]
            if s == 0:
                shifted.append(xf)
            else:
                rolled = pltpu.roll(xf, shift=(-s) % BS, axis=0)
                shifted.append(jnp.where(tap_mask[dk], rolled, 0.0))

        a = jnp.zeros((BS, H), jnp.float32)
        b = jnp.zeros((BS, H), jnp.float32)
        for dk in range(ksize):
            a = a + jnp.dot(shifted[dk], wconv_ref[layer, dk],
                            preferred_element_type=jnp.float32)
            b = b + jnp.dot(shifted[dk], wconv_ref[layer, ksize + dk],
                            preferred_element_type=jnp.float32)
        gated = a * jax.nn.sigmoid(b)                        # GatedCNN output

        vec = vec_ref[layer]                                 # (8, H) packed params
        g1, be1 = vec[0:1], vec[1:2]
        b1, b2 = vec[2:3], vec[3:4]
        g2, be2 = vec[4:5], vec[5:6]

        # ---- residual + LayerNorm 1 ----
        x1 = gated + xf
        m1 = jnp.mean(x1, axis=-1, keepdims=True)
        v1 = jnp.mean((x1 - m1) ** 2, axis=-1, keepdims=True)
        xn1 = (x1 - m1) * lax.rsqrt(v1 + LN_EPS) * g1 + be1

        # ---- FFN: relu(Linear1) -> Linear2, residual + LayerNorm 2 ----
        l1 = jnp.dot(xn1, wff_ref[layer, 0],
                     preferred_element_type=jnp.float32) + b1
        l1 = jnp.maximum(l1, 0.0)
        l2 = jnp.dot(l1, wff_ref[layer, 1],
                     preferred_element_type=jnp.float32) + b2
        x2 = xn1 + l2
        m2 = jnp.mean(x2, axis=-1, keepdims=True)
        v2 = jnp.mean((x2 - m2) ** 2, axis=-1, keepdims=True)
        xf = (x2 - m2) * lax.rsqrt(v2 + LN_EPS) * g2 + be2   # carried to next layer

    o_ref[...] = xf.astype(o_ref.dtype)                      # single HBM writeback


def stack_gated_cnn(x, params):
    """Apply the whole stack with ONE ungridded pallas_call (all weights in VMEM)."""
    B, S, H = x.shape
    L = len(params)
    K = params[0]["wa"].shape[0]
    pad = (K - 1) // 2
    BS = B * S

    # Pack per-layer weights into 3 arrays (3 DMAs) instead of 9*L tiny ones.
    wconv = jnp.stack(
        [jnp.concatenate([p["wa"], p["wb"]], axis=0) for p in params])   # (L, 2K, H, H)
    wff = jnp.stack([jnp.stack([p["W1"], p["W2"]]) for p in params])     # (L, 2, H, H)
    zpad = jnp.zeros((2, H), jnp.float32)
    vecs = jnp.stack(
        [jnp.concatenate([p["g1"], p["be1"], p["b1"], p["b2"],
                          p["g2"], p["be2"], zpad], axis=0)
         for p in params])                                               # (L, 8, H)

    kernel = functools.partial(_stack_kernel, num_layers=L, ksize=K, pad=pad, seq=S)

    out = pl.pallas_call(
        kernel,
        out_shape=jax.ShapeDtypeStruct((BS, H), x.dtype),
        in_specs=[pl.BlockSpec(memory_space=pltpu.MemorySpace.VMEM)
                  for _ in range(4)],
        out_specs=pl.BlockSpec(memory_space=pltpu.MemorySpace.VMEM),
    )(x.reshape(BS, H), wconv, wff, vecs)
    return out.reshape(B, S, H)


# --------------------------- pure-JAX reference ------------------------------
def _conv1d_ref(x, w_t):
    # x: (B,S,H), w_t: (K, H_in, H_out)  == PyTorch conv weight[:, :, k].T
    B, S, H = x.shape
    K = w_t.shape[0]
    pad = (K - 1) // 2
    xp = jnp.pad(x, ((0, 0), (pad, pad), (0, 0)))
    out = jnp.zeros((B, S, H), jnp.float32)
    for k in range(K):
        out = out + jnp.einsum("bsh,ho->bso", xp[:, k:k + S, :], w_t[k])
    return out


def _layer_ref(x, p):
    a = _conv1d_ref(x, p["wa"])
    b = _conv1d_ref(x, p["wb"])
    gcnn = a * jax.nn.sigmoid(b)
    x1 = gcnn + x

    def ln(v, g, be):
        m = jnp.mean(v, axis=-1, keepdims=True)
        va = jnp.mean((v - m) ** 2, axis=-1, keepdims=True)
        return (v - m) / jnp.sqrt(va + LN_EPS) * g[0] + be[0]

    xn1 = ln(x1, p["g1"], p["be1"])
    l1 = jnp.maximum(xn1 @ p["W1"] + p["b1"][0], 0.0)
    l2 = l1 @ p["W2"] + p["b2"][0]
    return ln(xn1 + l2, p["g2"], p["be2"])


def stack_ref(x, params):
    for p in params:
        x = _layer_ref(x, p)
    return x


# --------------------------------- main --------------------------------------
def make_params(key):
    params = []
    for _ in range(NUM_LAYERS):
        ks = jax.random.split(key, 8)
        key = ks[0]
        scale = 0.2
        p = {
            # wa[k] / wb[k] correspond to PyTorch conv weight[:, :, k].T (in, out)
            "wa": scale * jax.random.normal(ks[1], (KSIZE, HIDDEN, HIDDEN), jnp.float32),
            "wb": scale * jax.random.normal(ks[2], (KSIZE, HIDDEN, HIDDEN), jnp.float32),
            "g1": jnp.ones((1, HIDDEN), jnp.float32),
            "be1": jnp.zeros((1, HIDDEN), jnp.float32),
            "W1": scale * jax.random.normal(ks[3], (HIDDEN, HIDDEN), jnp.float32),
            "b1": 0.1 * jax.random.normal(ks[4], (1, HIDDEN), jnp.float32),
            "W2": scale * jax.random.normal(ks[5], (HIDDEN, HIDDEN), jnp.float32),
            "b2": 0.1 * jax.random.normal(ks[6], (1, HIDDEN), jnp.float32),
            "g2": 1.0 + 0.05 * jax.random.normal(ks[7], (1, HIDDEN), jnp.float32),
            "be2": jnp.zeros((1, HIDDEN), jnp.float32),
        }
        params.append(p)
    return params


if __name__ == "__main__":
    key = jax.random.PRNGKey(0)
    kx, kp = jax.random.split(key)
    x = jax.random.normal(kx, (BATCH, SEQ, HIDDEN), jnp.float32)
    params = make_params(kp)

    out = stack_gated_cnn(x, params)
    out = jax.block_until_ready(out)

    ref = jax.block_until_ready(stack_ref(x, params))
    assert out.shape == (BATCH, SEQ, HIDDEN)
    assert jnp.allclose(out, ref, atol=1e-4, rtol=1e-4), (
        float(jnp.max(jnp.abs(out - ref))))

    print("KERNEL_OK")
</pallas_src>

<mosaic_0001>
module attributes {stable_mosaic.version = 11 : i64} {
  func.func @_stack_kernel(%arg0: memref<16x32xf32, #tpu.memory_space<vmem>>, %arg1: memref<2x6x32x32xf32, #tpu.memory_space<vmem>>, %arg2: memref<2x2x32x32xf32, #tpu.memory_space<vmem>>, %arg3: memref<2x8x32xf32, #tpu.memory_space<vmem>>, %arg4: memref<16x32xf32, #tpu.memory_space<vmem>>) attributes {dimension_semantics = [], scalar_prefetch = 0 : i64, scratch_operands = 0 : i64, tpu.core_type = #tpu.core_type<tc>} {
    %c0 = arith.constant 0 : index
    %c0_0 = arith.constant 0 : index
    %0 = vector.load %arg0[%c0, %c0_0] : memref<16x32xf32, #tpu.memory_space<vmem>>, vector<16x32xf32>
    %1 = tpu.iota {dimensions = array<i32: 0>} : vector<16x32xi32>
    %c8_i32 = arith.constant 8 : i32
    %c0_i32 = arith.constant 0 : i32
    %2 = arith.cmpi eq, %c8_i32, %c0_i32 : i32
    %c1_i32 = arith.constant 1 : i32
    %3 = arith.select %2, %c1_i32, %c8_i32 : i32
    %4 = vector.broadcast %3 : i32 to vector<16x32xi32>
    %5 = arith.remsi %1, %4 : vector<16x32xi32>
    %c0_i32_1 = arith.constant 0 : i32
    %6 = vector.broadcast %c0_i32_1 : i32 to vector<16x32xi32>
    %7 = arith.cmpi ne, %5, %6 : vector<16x32xi32>
    %c0_i32_2 = arith.constant 0 : i32
    %8 = vector.broadcast %c0_i32_2 : i32 to vector<16x32xi32>
    %9 = arith.cmpi slt, %5, %8 : vector<16x32xi32>
    %c0_i32_3 = arith.constant 0 : i32
    %10 = arith.cmpi slt, %3, %c0_i32_3 : i32
    %11 = vector.broadcast %10 : i1 to vector<16x32xi1>
    %12 = vector.broadcast %11 : vector<16x32xi1> to vector<16x32xi1>
    %13 = arith.xori %9, %12 : vector<16x32xi1>
    %14 = arith.andi %13, %7 : vector<16x32xi1>
    %15 = vector.broadcast %3 : i32 to vector<16x32xi32>
    %16 = arith.addi %5, %15 : vector<16x32xi32>
    %17 = arith.select %14, %16, %5 : vector<16x32xi1>, vector<16x32xi32>
    %c-1_i32 = arith.constant -1 : i32
    %18 = vector.broadcast %c-1_i32 : i32 to vector<16x32xi32>
    %19 = arith.addi %17, %18 : vector<16x32xi32>
    %c0_i32_4 = arith.constant 0 : i32
    %20 = vector.broadcast %c0_i32_4 : i32 to vector<16x32xi32>
    %21 = arith.cmpi sge, %19, %20 : vector<16x32xi32>
    %c-1_i32_5 = arith.constant -1 : i32
    %22 = vector.broadcast %c-1_i32_5 : i32 to vector<16x32xi32>
    %23 = arith.addi %17, %22 : vector<16x32xi32>
    %c8_i32_6 = arith.constant 8 : i32
    %24 = vector.broadcast %c8_i32_6 : i32 to vector<16x32xi32>
    %25 = arith.cmpi slt, %23, %24 : vector<16x32xi32>
    %26 = arith.andi %21, %25 : vector<16x32xi1>
    %c1_i32_7 = arith.constant 1 : i32
    %27 = vector.broadcast %c1_i32_7 : i32 to vector<16x32xi32>
    %28 = arith.addi %17, %27 : vector<16x32xi32>
    %c0_i32_8 = arith.constant 0 : i32
    %29 = vector.broadcast %c0_i32_8 : i32 to vector<16x32xi32>
    %30 = arith.cmpi sge, %28, %29 : vector<16x32xi32>
    %c1_i32_9 = arith.constant 1 : i32
    %31 = vector.broadcast %c1_i32_9 : i32 to vector<16x32xi32>
    %32 = arith.addi %17, %31 : vector<16x32xi32>
    %c8_i32_10 = arith.constant 8 : i32
    %33 = vector.broadcast %c8_i32_10 : i32 to vector<16x32xi32>
    %34 = arith.cmpi slt, %32, %33 : vector<16x32xi32>
    %35 = arith.andi %30, %34 : vector<16x32xi1>
    %c1_i32_11 = arith.constant 1 : i32
    %36 = tpu.dynamic_rotate %0 by %c1_i32_11 dim 0 : vector<16x32xf32>, i32 -> vector<16x32xf32>
    %cst = arith.constant 0.000000e+00 : f32
    %37 = vector.broadcast %cst : f32 to vector<16x32xf32>
    %38 = arith.select %26, %36, %37 : vector<16x32xi1>, vector<16x32xf32>
    %c15_i32 = arith.constant 15 : i32
    %39 = tpu.dynamic_rotate %0 by %c15_i32 dim 0 : vector<16x32xf32>, i32 -> vector<16x32xf32>
    %cst_12 = arith.constant 0.000000e+00 : f32
    %40 = vector.broadcast %cst_12 : f32 to vector<16x32xf32>
    %41 = arith.select %35, %39, %40 : vector<16x32xi1>, vector<16x32xf32>
    %cst_13 = arith.constant 0.000000e+00 : f32
    %42 = vector.broadcast %cst_13 : f32 to vector<16x32xf32>
    %cst_14 = arith.constant 0.000000e+00 : f32
    %43 = vector.broadcast %cst_14 : f32 to vector<16x32xf32>
    %c0_15 = arith.constant 0 : index
    %c0_16 = arith.constant 0 : index
    %c0_17 = arith.constant 0 : index
    %c0_18 = arith.constant 0 : index
    %44 = vector.load %arg1[%c0_15, %c0_16, %c0_17, %c0_18] : memref<2x6x32x32xf32, #tpu.memory_space<vmem>>, vector<1x1x32x32xf32>
    %45 = vector.shape_cast %44 : vector<1x1x32x32xf32> to vector<32x32xf32>
    %cst_19 = arith.constant dense<0.000000e+00> : vector<16x32xf32>
    %46 = tpu.matmul %38, %45, %cst_19 {dimension_numbers = #tpu.dot_dimension_numbers<[1], [0], [0], [1], [0, 0, 1, 1], [], []>} : vector<16x32xf32>, vector<32x32xf32>, vector<16x32xf32> -> vector<16x32xf32>
    %47 = arith.addf %42, %46 : vector<16x32xf32>
    %c0_20 = arith.constant 0 : index
    %c3 = arith.constant 3 : index
    %c0_21 = arith.constant 0 : index
    %c0_22 = arith.constant 0 : index
    %48 = vector.load %arg1[%c0_20, %c3, %c0_21, %c0_22] : memref<2x6x32x32xf32, #tpu.memory_space<vmem>>, vector<1x1x32x32xf32>
    %49 = vector.shape_cast %48 : vector<1x1x32x32xf32> to vector<32x32xf32>
    %cst_23 = arith.constant dense<0.000000e+00> : vector<16x32xf32>
    %50 = tpu.matmul %38, %49, %cst_23 {dimension_numbers = #tpu.dot_dimension_numbers<[1], [0], [0], [1], [0, 0, 1, 1], [], []>} : vector<16x32xf32>, vector<32x32xf32>, vector<16x32xf32> -> vector<16x32xf32>
    %51 = arith.addf %43, %50 : vector<16x32xf32>
    %c0_24 = arith.constant 0 : index
    %c1 = arith.constant 1 : index
    %c0_25 = arith.constant 0 : index
    %c0_26 = arith.constant 0 : index
    %52 = vector.load %arg1[%c0_24, %c1, %c0_25, %c0_26] : memref<2x6x32x32xf32, #tpu.memory_space<vmem>>, vector<1x1x32x32xf32>
    %53 = vector.shape_cast %52 : vector<1x1x32x32xf32> to vector<32x32xf32>
    %cst_27 = arith.constant dense<0.000000e+00> : vector<16x32xf32>
    %54 = tpu.matmul %0, %53, %cst_27 {dimension_numbers = #tpu.dot_dimension_numbers<[1], [0], [0], [1], [0, 0, 1, 1], [], []>} : vector<16x32xf32>, vector<32x32xf32>, vector<16x32xf32> -> vector<16x32xf32>
    %55 = arith.addf %47, %54 : vector<16x32xf32>
    %c0_28 = arith.constant 0 : index
    %c4 = arith.constant 4 : index
    %c0_29 = arith.constant 0 : index
    %c0_30 = arith.constant 0 : index
    %56 = vector.load %arg1[%c0_28, %c4, %c0_29, %c0_30] : memref<2x6x32x32xf32, #tpu.memory_space<vmem>>, vector<1x1x32x32xf32>
    %57 = vector.shape_cast %56 : vector<1x1x32x32xf32> to vector<32x32xf32>
    %cst_31 = arith.constant dense<0.000000e+00> : vector<16x32xf32>
    %58 = tpu.matmul %0, %57, %cst_31 {dimension_numbers = #tpu.dot_dimension_numbers<[1], [0], [0], [1], [0, 0, 1, 1], [], []>} : vector<16x32xf32>, vector<32x32xf32>, vector<16x32xf32> -> vector<16x32xf32>
    %59 = arith.addf %51, %58 : vector<16x32xf32>
    %c0_32 = arith.constant 0 : index
    %c2 = arith.constant 2 : index
    %c0_33 = arith.constant 0 : index
    %c0_34 = arith.constant 0 : index
    %60 = vector.load %arg1[%c0_32, %c2, %c0_33, %c0_34] : memref<2x6x32x32xf32, #tpu.memory_space<vmem>>, vector<1x1x32x32xf32>
    %61 = vector.shape_cast %60 : vector<1x1x32x32xf32> to vector<32x32xf32>
    %cst_35 = arith.constant dense<0.000000e+00> : vector<16x32xf32>
    %62 = tpu.matmul %41, %61, %cst_35 {dimension_numbers = #tpu.dot_dimension_numbers<[1], [0], [0], [1], [0, 0, 1, 1], [], []>} : vector<16x32xf32>, vector<32x32xf32>, vector<16x32xf32> -> vector<16x32xf32>
    %63 = arith.addf %55, %62 : vector<16x32xf32>
    %c0_36 = arith.constant 0 : index
    %c5 = arith.constant 5 : index
    %c0_37 = arith.constant 0 : index
    %c0_38 = arith.constant 0 : index
    %64 = vector.load %arg1[%c0_36, %c5, %c0_37, %c0_38] : memref<2x6x32x32xf32, #tpu.memory_space<vmem>>, vector<1x1x32x32xf32>
    %65 = vector.shape_cast %64 : vector<1x1x32x32xf32> to vector<32x32xf32>
    %cst_39 = arith.constant dense<0.000000e+00> : vector<16x32xf32>
    %66 = tpu.matmul %41, %65, %cst_39 {dimension_numbers = #tpu.dot_dimension_numbers<[1], [0], [0], [1], [0, 0, 1, 1], [], []>} : vector<16x32xf32>, vector<32x32xf32>, vector<16x32xf32> -> vector<16x32xf32>
    %67 = arith.addf %59, %66 : vector<16x32xf32>
    %68 = arith.negf %67 : vector<16x32xf32>
    %69 = math.exp %68 : vector<16x32xf32>
    %cst_40 = arith.constant 1.000000e+00 : f32
    %70 = vector.broadcast %cst_40 : f32 to vector<16x32xf32>
    %71 = arith.addf %70, %69 : vector<16x32xf32>
    %72 = arith.divf %70, %71 : vector<16x32xf32>
    %73 = arith.mulf %63, %72 : vector<16x32xf32>
    %c0_41 = arith.constant 0 : index
    %c0_42 = arith.constant 0 : index
    %c0_43 = arith.constant 0 : index
    %74 = vector.load %arg3[%c0_41, %c0_42, %c0_43] : memref<2x8x32xf32, #tpu.memory_space<vmem>>, vector<1x8x32xf32>
    %75 = vector.shape_cast %74 : vector<1x8x32xf32> to vector<8x32xf32>
    %76 = vector.extract_strided_slice %75 {offsets = [0, 0], sizes = [1, 32], strides = [1, 1]} : vector<8x32xf32> to vector<1x32xf32>
    %77 = vector.extract_strided_slice %75 {offsets = [1, 0], sizes = [1, 32], strides = [1, 1]} : vector<8x32xf32> to vector<1x32xf32>
    %78 = vector.extract_strided_slice %75 {offsets = [2, 0], sizes = [1, 32], strides = [1, 1]} : vector<8x32xf32> to vector<1x32xf32>
    %79 = vector.extract_strided_slice %75 {offsets = [3, 0], sizes = [1, 32], strides = [1, 1]} : vector<8x32xf32> to vector<1x32xf32>
    %80 = vector.extract_strided_slice %75 {offsets = [4, 0], sizes = [1, 32], strides = [1, 1]} : vector<8x32xf32> to vector<1x32xf32>
    %81 = vector.extract_strided_slice %75 {offsets = [5, 0], sizes = [1, 32], strides = [1, 1]} : vector<8x32xf32> to vector<1x32xf32>
    %82 = arith.addf %73, %0 : vector<16x32xf32>
    %cst_44 = arith.constant dense<0.000000e+00> : vector<16xf32>
    %83 = vector.multi_reduction <add>, %82, %cst_44 [1] : vector<16x32xf32> to vector<16xf32>
    %84 = vector.shape_cast %83 : vector<16xf32> to vector<16x1xf32>
    %cst_45 = arith.constant 3.200000e+01 : f32
    %85 = vector.broadcast %cst_45 : f32 to vector<16x1xf32>
    %86 = arith.divf %84, %85 : vector<16x1xf32>
    %87 = vector.broadcast %86 : vector<16x1xf32> to vector<16x32xf32>
    %88 = arith.subf %82, %87 : vector<16x32xf32>
    %89 = arith.mulf %88, %88 : vector<16x32xf32>
    %cst_46 = arith.constant dense<0.000000e+00> : vector<16xf32>
    %90 = vector.multi_reduction <add>, %89, %cst_46 [1] : vector<16x32xf32> to vector<16xf32>
    %91 = vector.shape_cast %90 : vector<16xf32> to vector<16x1xf32>
    %cst_47 = arith.constant 3.200000e+01 : f32
    %92 = vector.broadcast %cst_47 : f32 to vector<16x1xf32>
    %93 = arith.divf %91, %92 : vector<16x1xf32>
    %94 = vector.broadcast %86 : vector<16x1xf32> to vector<16x32xf32>
    %95 = arith.subf %82, %94 : vector<16x32xf32>
    %cst_48 = arith.constant 9.99999974E-6 : f32
    %96 = vector.broadcast %cst_48 : f32 to vector<16x1xf32>
    %97 = arith.addf %93, %96 : vector<16x1xf32>
    %98 = math.rsqrt %97 : vector<16x1xf32>
    %99 = vector.broadcast %98 : vector<16x1xf32> to vector<16x32xf32>
    %100 = arith.mulf %95, %99 : vector<16x32xf32>
    %101 = vector.broadcast %76 : vector<1x32xf32> to vector<16x32xf32>
    %102 = arith.mulf %100, %101 : vector<16x32xf32>
    %103 = vector.broadcast %77 : vector<1x32xf32> to vector<16x32xf32>
    %104 = arith.addf %102, %103 : vector<16x32xf32>
    %c0_49 = arith.constant 0 : index
    %c0_50 = arith.constant 0 : index
    %c0_51 = arith.constant 0 : index
    %c0_52 = arith.constant 0 : index
    %105 = vector.load %arg2[%c0_49, %c0_50, %c0_51, %c0_52] : memref<2x2x32x32xf32, #tpu.memory_space<vmem>>, vector<1x1x32x32xf32>
    %106 = vector.shape_cast %105 : vector<1x1x32x32xf32> to vector<32x32xf32>
    %cst_53 = arith.constant dense<0.000000e+00> : vector<16x32xf32>
    %107 = tpu.matmul %104, %106, %cst_53 {dimension_numbers = #tpu.dot_dimension_numbers<[1], [0], [0], [1], [0, 0, 1, 1], [], []>} : vector<16x32xf32>, vector<32x32xf32>, vector<16x32xf32> -> vector<16x32xf32>
    %108 = vector.broadcast %78 : vector<1x32xf32> to vector<16x32xf32>
    %109 = arith.addf %107, %108 : vector<16x32xf32>
    %cst_54 = arith.constant 0.000000e+00 : f32
    %110 = vector.broadcast %cst_54 : f32 to vector<16x32xf32>
    %111 = arith.maximumf %109, %110 : vector<16x32xf32>
    %c0_55 = arith.constant 0 : index
    %c1_56 = arith.constant 1 : index
    %c0_57 = arith.constant 0 : index
    %c0_58 = arith.constant 0 : index
    %112 = vector.load %arg2[%c0_55, %c1_56, %c0_57, %c0_58] : memref<2x2x32x32xf32, #tpu.memory_space<vmem>>, vector<1x1x32x32xf32>
    %113 = vector.shape_cast %112 : vector<1x1x32x32xf32> to vector<32x32xf32>
    %cst_59 = arith.constant dense<0.000000e+00> : vector<16x32xf32>
    %114 = tpu.matmul %111, %113, %cst_59 {dimension_numbers = #tpu.dot_dimension_numbers<[1], [0], [0], [1], [0, 0, 1, 1], [], []>} : vector<16x32xf32>, vector<32x32xf32>, vector<16x32xf32> -> vector<16x32xf32>
    %115 = vector.broadcast %79 : vector<1x32xf32> to vector<16x32xf32>
    %116 = arith.addf %114, %115 : vector<16x32xf32>
    %117 = arith.addf %104, %116 : vector<16x32xf32>
    %cst_60 = arith.constant dense<0.000000e+00> : vector<16xf32>
    %118 = vector.multi_reduction <add>, %117, %cst_60 [1] : vector<16x32xf32> to vector<16xf32>
    %119 = vector.shape_cast %118 : vector<16xf32> to vector<16x1xf32>
    %cst_61 = arith.constant 3.200000e+01 : f32
    %120 = vector.broadcast %cst_61 : f32 to vector<16x1xf32>
    %121 = arith.divf %119, %120 : vector<16x1xf32>
    %122 = vector.broadcast %121 : vector<16x1xf32> to vector<16x32xf32>
    %123 = arith.subf %117, %122 : vector<16x32xf32>
    %124 = arith.mulf %123, %123 : vector<16x32xf32>
    %cst_62 = arith.constant dense<0.000000e+00> : vector<16xf32>
    %125 = vector.multi_reduction <add>, %124, %cst_62 [1] : vector<16x32xf32> to vector<16xf32>
    %126 = vector.shape_cast %125 : vector<16xf32> to vector<16x1xf32>
    %cst_63 = arith.constant 3.200000e+01 : f32
    %127 = vector.broadcast %cst_63 : f32 to vector<16x1xf32>
    %128 = arith.divf %126, %127 : vector<16x1xf32>
    %129 = vector.broadcast %121 : vector<16x1xf32> to vector<16x32xf32>
    %130 = arith.subf %117, %129 : vector<16x32xf32>
    %cst_64 = arith.constant 9.99999974E-6 : f32
    %131 = vector.broadcast %cst_64 : f32 to vector<16x1xf32>
    %132 = arith.addf %128, %131 : vector<16x1xf32>
    %133 = math.rsqrt %132 : vector<16x1xf32>
    %134 = vector.broadcast %133 : vector<16x1xf32> to vector<16x32xf32>
    %135 = arith.mulf %130, %134 : vector<16x32xf32>
    %136 = vector.broadcast %80 : vector<1x32xf32> to vector<16x32xf32>
    %137 = arith.mulf %135, %136 : vector<16x32xf32>
    %138 = vector.broadcast %81 : vector<1x32xf32> to vector<16x32xf32>
    %139 = arith.addf %137, %138 : vector<16x32xf32>
    %c1_i32_65 = arith.constant 1 : i32
    %140 = tpu.dynamic_rotate %139 by %c1_i32_65 dim 0 : vector<16x32xf32>, i32 -> vector<16x32xf32>
    %cst_66 = arith.constant 0.000000e+00 : f32
    %141 = vector.broadcast %cst_66 : f32 to vector<16x32xf32>
    %142 = arith.select %26, %140, %141 : vector<16x32xi1>, vector<16x32xf32>
    %c15_i32_67 = arith.constant 15 : i32
    %143 = tpu.dynamic_rotate %139 by %c15_i32_67 dim 0 : vector<16x32xf32>, i32 -> vector<16x32xf32>
    %cst_68 = arith.constant 0.000000e+00 : f32
    %144 = vector.broadcast %cst_68 : f32 to vector<16x32xf32>
    %145 = arith.select %35, %143, %144 : vector<16x32xi1>, vector<16x32xf32>
    %cst_69 = arith.constant 0.000000e+00 : f32
    %146 = vector.broadcast %cst_69 : f32 to vector<16x32xf32>
    %cst_70 = arith.constant 0.000000e+00 : f32
    %147 = vector.broadcast %cst_70 : f32 to vector<16x32xf32>
    %c1_71 = arith.constant 1 : index
    %c0_72 = arith.constant 0 : index
    %c0_73 = arith.constant 0 : index
    %c0_74 = arith.constant 0 : index
    %148 = vector.load %arg1[%c1_71, %c0_72, %c0_73, %c0_74] : memref<2x6x32x32xf32, #tpu.memory_space<vmem>>, vector<1x1x32x32xf32>
    %149 = vector.shape_cast %148 : vector<1x1x32x32xf32> to vector<32x32xf32>
    %cst_75 = arith.constant dense<0.000000e+00> : vector<16x32xf32>
    %150 = tpu.matmul %142, %149, %cst_75 {dimension_numbers = #tpu.dot_dimension_numbers<[1], [0], [0], [1], [0, 0, 1, 1], [], []>} : vector<16x32xf32>, vector<32x32xf32>, vector<16x32xf32> -> vector<16x32xf32>
    %151 = arith.addf %146, %150 : vector<16x32xf32>
    %c1_76 = arith.constant 1 : index
    %c3_77 = arith.constant 3 : index
    %c0_78 = arith.constant 0 : index
    %c0_79 = arith.constant 0 : index
    %152 = vector.load %arg1[%c1_76, %c3_77, %c0_78, %c0_79] : memref<2x6x32x32xf32, #tpu.memory_space<vmem>>, vector<1x1x32x32xf32>
    %153 = vector.shape_cast %152 : vector<1x1x32x32xf32> to vector<32x32xf32>
    %cst_80 = arith.constant dense<0.000000e+00> : vector<16x32xf32>
    %154 = tpu.matmul %142, %153, %cst_80 {dimension_numbers = #tpu.dot_dimension_numbers<[1], [0], [0], [1], [0, 0, 1, 1], [], []>} : vector<16x32xf32>, vector<32x32xf32>, vector<16x32xf32> -> vector<16x32xf32>
    %155 = arith.addf %147, %154 : vector<16x32xf32>
    %c1_81 = arith.constant 1 : index
    %c1_82 = arith.constant 1 : index
    %c0_83 = arith.constant 0 : index
    %c0_84 = arith.constant 0 : index
    %156 = vector.load %arg1[%c1_81, %c1_82, %c0_83, %c0_84] : memref<2x6x32x32xf32, #tpu.memory_space<vmem>>, vector<1x1x32x32xf32>
    %157 = vector.shape_cast %156 : vector<1x1x32x32xf32> to vector<32x32xf32>
    %cst_85 = arith.constant dense<0.000000e+00> : vector<16x32xf32>
    %158 = tpu.matmul %139, %157, %cst_85 {dimension_numbers = #tpu.dot_dimension_numbers<[1], [0], [0], [1], [0, 0, 1, 1], [], []>} : vector<16x32xf32>, vector<32x32xf32>, vector<16x32xf32> -> vector<16x32xf32>
    %159 = arith.addf %151, %158 : vector<16x32xf32>
    %c1_86 = arith.constant 1 : index
    %c4_87 = arith.constant 4 : index
    %c0_88 = arith.constant 0 : index
    %c0_89 = arith.constant 0 : index
    %160 = vector.load %arg1[%c1_86, %c4_87, %c0_88, %c0_89] : memref<2x6x32x32xf32, #tpu.memory_space<vmem>>, vector<1x1x32x32xf32>
    %161 = vector.shape_cast %160 : vector<1x1x32x32xf32> to vector<32x32xf32>
    %cst_90 = arith.constant dense<0.000000e+00> : vector<16x32xf32>
    %162 = tpu.matmul %139, %161, %cst_90 {dimension_numbers = #tpu.dot_dimension_numbers<[1], [0], [0], [1], [0, 0, 1, 1], [], []>} : vector<16x32xf32>, vector<32x32xf32>, vector<16x32xf32> -> vector<16x32xf32>
    %163 = arith.addf %155, %162 : vector<16x32xf32>
    %c1_91 = arith.constant 1 : index
    %c2_92 = arith.constant 2 : index
    %c0_93 = arith.constant 0 : index
    %c0_94 = arith.constant 0 : index
    %164 = vector.load %arg1[%c1_91, %c2_92, %c0_93, %c0_94] : memref<2x6x32x32xf32, #tpu.memory_space<vmem>>, vector<1x1x32x32xf32>
    %165 = vector.shape_cast %164 : vector<1x1x32x32xf32> to vector<32x32xf32>
    %cst_95 = arith.constant dense<0.000000e+00> : vector<16x32xf32>
    %166 = tpu.matmul %145, %165, %cst_95 {dimension_numbers = #tpu.dot_dimension_numbers<[1], [0], [0], [1], [0, 0, 1, 1], [], []>} : vector<16x32xf32>, vector<32x32xf32>, vector<16x32xf32> -> vector<16x32xf32>
    %167 = arith.addf %159, %166 : vector<16x32xf32>
    %c1_96 = arith.constant 1 : index
    %c5_97 = arith.constant 5 : index
    %c0_98 = arith.constant 0 : index
    %c0_99 = arith.constant 0 : index
    %168 = vector.load %arg1[%c1_96, %c5_97, %c0_98, %c0_99] : memref<2x6x32x32xf32, #tpu.memory_space<vmem>>, vector<1x1x32x32xf32>
    %169 = vector.shape_cast %168 : vector<1x1x32x32xf32> to vector<32x32xf32>
    %cst_100 = arith.constant dense<0.000000e+00> : vector<16x32xf32>
    %170 = tpu.matmul %145, %169, %cst_100 {dimension_numbers = #tpu.dot_dimension_numbers<[1], [0], [0], [1], [0, 0, 1, 1], [], []>} : vector<16x32xf32>, vector<32x32xf32>, vector<16x32xf32> -> vector<16x32xf32>
    %171 = arith.addf %163, %170 : vector<16x32xf32>
    %172 = arith.negf %171 : vector<16x32xf32>
    %173 = math.exp %172 : vector<16x32xf32>
    %cst_101 = arith.constant 1.000000e+00 : f32
    %174 = vector.broadcast %cst_101 : f32 to vector<16x32xf32>
    %175 = arith.addf %174, %173 : vector<16x32xf32>
    %176 = arith.divf %174, %175 : vector<16x32xf32>
    %177 = arith.mulf %167, %176 : vector<16x32xf32>
    %c1_102 = arith.constant 1 : index
    %c0_103 = arith.constant 0 : index
    %c0_104 = arith.constant 0 : index
    %178 = vector.load %arg3[%c1_102, %c0_103, %c0_104] : memref<2x8x32xf32, #tpu.memory_space<vmem>>, vector<1x8x32xf32>
    %179 = vector.shape_cast %178 : vector<1x8x32xf32> to vector<8x32xf32>
    %180 = vector.extract_strided_slice %179 {offsets = [0, 0], sizes = [1, 32], strides = [1, 1]} : vector<8x32xf32> to vector<1x32xf32>
    %181 = vector.extract_strided_slice %179 {offsets = [1, 0], sizes = [1, 32], strides = [1, 1]} : vector<8x32xf32> to vector<1x32xf32>
    %182 = vector.extract_strided_slice %179 {offsets = [2, 0], sizes = [1, 32], strides = [1, 1]} : vector<8x32xf32> to vector<1x32xf32>
    %183 = vector.extract_strided_slice %179 {offsets = [3, 0], sizes = [1, 32], strides = [1, 1]} : vector<8x32xf32> to vector<1x32xf32>
    %184 = vector.extract_strided_slice %179 {offsets = [4, 0], sizes = [1, 32], strides = [1, 1]} : vector<8x32xf32> to vector<1x32xf32>
    %185 = vector.extract_strided_slice %179 {offsets = [5, 0], sizes = [1, 32], strides = [1, 1]} : vector<8x32xf32> to vector<1x32xf32>
    %186 = arith.addf %177, %139 : vector<16x32xf32>
    %cst_105 = arith.constant dense<0.000000e+00> : vector<16xf32>
    %187 = vector.multi_reduction <add>, %186, %cst_105 [1] : vector<16x32xf32> to vector<16xf32>
    %188 = vector.shape_cast %187 : vector<16xf32> to vector<16x1xf32>
    %cst_106 = arith.constant 3.200000e+01 : f32
    %189 = vector.broadcast %cst_106 : f32 to vector<16x1xf32>
    %190 = arith.divf %188, %189 : vector<16x1xf32>
    %191 = vector.broadcast %190 : vector<16x1xf32> to vector<16x32xf32>
    %192 = arith.subf %186, %191 : vector<16x32xf32>
    %193 = arith.mulf %192, %192 : vector<16x32xf32>
    %cst_107 = arith.constant dense<0.000000e+00> : vector<16xf32>
    %194 = vector.multi_reduction <add>, %193, %cst_107 [1] : vector<16x32xf32> to vector<16xf32>
    %195 = vector.shape_cast %194 : vector<16xf32> to vector<16x1xf32>
    %cst_108 = arith.constant 3.200000e+01 : f32
    %196 = vector.broadcast %cst_108 : f32 to vector<16x1xf32>
    %197 = arith.divf %195, %196 : vector<16x1xf32>
    %198 = vector.broadcast %190 : vector<16x1xf32> to vector<16x32xf32>
    %199 = arith.subf %186, %198 : vector<16x32xf32>
    %cst_109 = arith.constant 9.99999974E-6 : f32
    %200 = vector.broadcast %cst_109 : f32 to vector<16x1xf32>
    %201 = arith.addf %197, %200 : vector<16x1xf32>
    %202 = math.rsqrt %201 : vector<16x1xf32>
    %203 = vector.broadcast %202 : vector<16x1xf32> to vector<16x32xf32>
    %204 = arith.mulf %199, %203 : vector<16x32xf32>
    %205 = vector.broadcast %180 : vector<1x32xf32> to vector<16x32xf32>
    %206 = arith.mulf %204, %205 : vector<16x32xf32>
    %207 = vector.broadcast %181 : vector<1x32xf32> to vector<16x32xf32>
    %208 = arith.addf %206, %207 : vector<16x32xf32>
    %c1_110 = arith.constant 1 : index
    %c0_111 = arith.constant 0 : index
    %c0_112 = arith.constant 0 : index
    %c0_113 = arith.constant 0 : index
    %209 = vector.load %arg2[%c1_110, %c0_111, %c0_112, %c0_113] : memref<2x2x32x32xf32, #tpu.memory_space<vmem>>, vector<1x1x32x32xf32>
    %210 = vector.shape_cast %209 : vector<1x1x32x32xf32> to vector<32x32xf32>
    %cst_114 = arith.constant dense<0.000000e+00> : vector<16x32xf32>
    %211 = tpu.matmul %208, %210, %cst_114 {dimension_numbers = #tpu.dot_dimension_numbers<[1], [0], [0], [1], [0, 0, 1, 1], [], []>} : vector<16x32xf32>, vector<32x32xf32>, vector<16x32xf32> -> vector<16x32xf32>
    %212 = vector.broadcast %182 : vector<1x32xf32> to vector<16x32xf32>
    %213 = arith.addf %211, %212 : vector<16x32xf32>
    %cst_115 = arith.constant 0.000000e+00 : f32
    %214 = vector.broadcast %cst_115 : f32 to vector<16x32xf32>
    %215 = arith.maximumf %213, %214 : vector<16x32xf32>
    %c1_116 = arith.constant 1 : index
    %c1_117 = arith.constant 1 : index
    %c0_118 = arith.constant 0 : index
    %c0_119 = arith.constant 0 : index
    %216 = vector.load %arg2[%c1_116, %c1_117, %c0_118, %c0_119] : memref<2x2x32x32xf32, #tpu.memory_space<vmem>>, vector<1x1x32x32xf32>
    %217 = vector.shape_cast %216 : vector<1x1x32x32xf32> to vector<32x32xf32>
    %cst_120 = arith.constant dense<0.000000e+00> : vector<16x32xf32>
    %218 = tpu.matmul %215, %217, %cst_120 {dimension_numbers = #tpu.dot_dimension_numbers<[1], [0], [0], [1], [0, 0, 1, 1], [], []>} : vector<16x32xf32>, vector<32x32xf32>, vector<16x32xf32> -> vector<16x32xf32>
    %219 = vector.broadcast %183 : vector<1x32xf32> to vector<16x32xf32>
    %220 = arith.addf %218, %219 : vector<16x32xf32>
    %221 = arith.addf %208, %220 : vector<16x32xf32>
    %cst_121 = arith.constant dense<0.000000e+00> : vector<16xf32>
    %222 = vector.multi_reduction <add>, %221, %cst_121 [1] : vector<16x32xf32> to vector<16xf32>
    %223 = vector.shape_cast %222 : vector<16xf32> to vector<16x1xf32>
    %cst_122 = arith.constant 3.200000e+01 : f32
    %224 = vector.broadcast %cst_122 : f32 to vector<16x1xf32>
    %225 = arith.divf %223, %224 : vector<16x1xf32>
    %226 = vector.broadcast %225 : vector<16x1xf32> to vector<16x32xf32>
    %227 = arith.subf %221, %226 : vector<16x32xf32>
    %228 = arith.mulf %227, %227 : vector<16x32xf32>
    %cst_123 = arith.constant dense<0.000000e+00> : vector<16xf32>
    %229 = vector.multi_reduction <add>, %228, %cst_123 [1] : vector<16x32xf32> to vector<16xf32>
    %230 = vector.shape_cast %229 : vector<16xf32> to vector<16x1xf32>
    %cst_124 = arith.constant 3.200000e+01 : f32
    %231 = vector.broadcast %cst_124 : f32 to vector<16x1xf32>
    %232 = arith.divf %230, %231 : vector<16x1xf32>
    %233 = vector.broadcast %225 : vector<16x1xf32> to vector<16x32xf32>
    %234 = arith.subf %221, %233 : vector<16x32xf32>
    %cst_125 = arith.constant 9.99999974E-6 : f32
    %235 = vector.broadcast %cst_125 : f32 to vector<16x1xf32>
    %236 = arith.addf %232, %235 : vector<16x1xf32>
    %237 = math.rsqrt %236 : vector<16x1xf32>
    %238 = vector.broadcast %237 : vector<16x1xf32> to vector<16x32xf32>
    %239 = arith.mulf %234, %238 : vector<16x32xf32>
    %240 = vector.broadcast %184 : vector<1x32xf32> to vector<16x32xf32>
    %241 = arith.mulf %239, %240 : vector<16x32xf32>
    %242 = vector.broadcast %185 : vector<1x32xf32> to vector<16x32xf32>
    %243 = arith.addf %241, %242 : vector<16x32xf32>
    %c0_126 = arith.constant 0 : index
    %c0_127 = arith.constant 0 : index
    %244 = vector.load %arg4[%c0_126, %c0_127] : memref<16x32xf32, #tpu.memory_space<vmem>>, vector<16x32xf32>
    tpu.vector_store %arg4[%c0_126, %c0_127], %243 {strides = array<i32>} : memref<16x32xf32, #tpu.memory_space<vmem>>, vector<16x32xf32>,
    return
  }
}

</mosaic_0001>

<bundles_post_ra>
// kernel: tpu_custom_call.1
= control target key start
LH: loop header
LB: loop body
LE: loop exit
PB: predicated region body
PF: predicated region fallthrough
CT: control target
= control target key end

     0   :  { %9 = vsyncpa [#allocation3], 0  ;;  %s2623_s0 = inlined_call_operand.hbm [shape: f32[16,32], index: 0, kind: input, shape index: {}]   ;;  %s2624_s1 = inlined_call_operand.hbm [shape: f32[2,6,32,32], index: 1, kind: input, shape index: {}]   ;;  %s2625_s2 = inlined_call_operand.hbm [shape: f32[2,2,32,32], index: 2, kind: input, shape index: {}]   ;;  %s2626_s3 = inlined_call_operand.hbm [shape: f32[2,8,32], index: 3, kind: input, shape index: {}]   ;;  %s2627_s4 = inlined_call_operand.hbm [shape: f32[16,32], index: 4, kind: output, shape index: {}]  }
   0x1   :  { %10 = vsyncpa [#allocation6], 0 }
   0x2   :  { %11 = vsyncpa [#allocation9], 0 }
   0x3   :  { %12 = vsyncpa [#allocation4], 0  ;;  %s2333_s15 = smov [#allocation5]   ;;  %s2334_s17 = smov [#allocation2]  }
   0x4   :  { %s30_s16 = sshll.u32 %s2333_s15, 4  ;;  %s18_s18 = sshll.u32 %s2334_s17, 4  ;;  %s31_s16 = int_to_ptr.vmem [resolvable:$true] %s30_s16  ;;  %s2365_s18 = int_to_ptr.vmem [resolvable:$true] %s18_s18 }
   0x5   :  { %s2215_s21 = scalar_lea.hbm %s2624_s1, 6144 }
   0x6   :  { %p2216_p0 = scmp.ne.s32.totalorder %s2624_s1, %s2215_s21  ;;  %p2219_p1 = scmp.lt.u32.totalorder %s2215_s21, %s2624_s1 }
   0x8   :  { %p2221_p2 = pnand %p2219_p1, %p2216_p0 }
   0xa   :  { %2224 = shalt.err (!%p2221_p2)
}
   0xb   :  { %s2225_s26 = scalar_lea.vmem %s31_s16, 6144  ;;  %p2230_p4 = scmp.lt.s32.totalorder %s31_s16, %s31_s16 }
   0xc   :  { %p2226_p3 = scmp.ne.s32.totalorder %s31_s16, %s2225_s26  ;;  %p2231_p5 = scmp.lt.s32.totalorder %s2225_s26, %s2225_s26 }
   0xe   :  { %p2232_p6 = por %p2231_p5, %p2230_p4 }
  0x10   :  { %p2233_p7 = pnand %p2232_p6, %p2226_p3 }
  0x12   :  { %2236 = shalt.err (!%p2233_p7)
}
  0x13   :  { %s2335_s27 = smov 128   ;;  %s2336_s28 = smov 8  }
  0x14   :  { %36 = dma.hbm_to_vmem [thread:$0]  %s2624_s1, 6144, %s31_s16, [#allocation6], %s2335_s27, %s2335_s27, %s2336_s28  }
  0x15   :  { %s2237_s7 = scalar_lea.hbm %s2623_s0, 256 }
  0x16   :  { %p2238_p8 = scmp.ne.s32.totalorder %s2623_s0, %s2237_s7  ;;  %p2241_p9 = scmp.lt.u32.totalorder %s2237_s7, %s2623_s0 }
  0x18   :  { %p2243_p10 = pnand %p2241_p9, %p2238_p8 }
  0x1a   :  { %2246 = shalt.err (!%p2243_p10)
}
  0x1b   :  { %s2247_s12 = scalar_lea.vmem %s2365_s18, 256  ;;  %p2252_p12 = scmp.lt.s32.totalorder %s2365_s18, %s2365_s18 }
  0x1c   :  { %p2248_p11 = scmp.ne.s32.totalorder %s2365_s18, %s2247_s12  ;;  %p2253_p13 = scmp.lt.s32.totalorder %s2247_s12, %s2247_s12 }
  0x1e   :  { %p2254_p0 = por %p2253_p13, %p2252_p12 }
  0x20   :  { %p2255_p1 = pnand %p2254_p0, %p2248_p11 }
  0x22   :  { %2258 = shalt.err (!%p2255_p1)
}
  0x23   :  { %24 = dma.hbm_to_vmem [thread:$0]  %s2623_s0, 256, %s2365_s18, [#allocation3], %s2335_s27, %s2335_s27, %s2336_s28  }
  0x24   :  { %s2337_s14 = smov [#allocation7]   ;;  %s2338_s16 = smov [#allocation8]  }
  0x25   :  { %s42_s15 = sshll.u32 %s2337_s14, 4  ;;  %s54_s17 = sshll.u32 %s2338_s16, 4  ;;  %s43_s15 = int_to_ptr.vmem [resolvable:$true] %s42_s15  ;;  %s2402_s17 = int_to_ptr.vmem [resolvable:$true] %s54_s17 }
  0x26   :  { %s2259_s21 = scalar_lea.hbm %s2625_s2, 2048 }
  0x27   :  { %p2260_p2 = scmp.ne.s32.totalorder %s2625_s2, %s2259_s21  ;;  %p2263_p3 = scmp.lt.u32.totalorder %s2259_s21, %s2625_s2 }
  0x29   :  { %p2265_p4 = pnand %p2263_p3, %p2260_p2 }
  0x2b   :  { %2268 = shalt.err (!%p2265_p4)
}
  0x2c   :  { %s2269_s0 = scalar_lea.vmem %s43_s15, 2048  ;;  %p2274_p6 = scmp.lt.s32.totalorder %s43_s15, %s43_s15 }
  0x2d   :  { %p2270_p5 = scmp.ne.s32.totalorder %s43_s15, %s2269_s0  ;;  %p2275_p7 = scmp.lt.s32.totalorder %s2269_s0, %s2269_s0 }
  0x2f   :  { %p2276_p8 = por %p2275_p7, %p2274_p6 }
  0x31   :  { %p2277_p9 = pnand %p2276_p8, %p2270_p5 }
  0x33   :  { %2280 = shalt.err (!%p2277_p9)
}
  0x34   :  { %48 = dma.hbm_to_vmem [thread:$0]  %s2625_s2, 2048, %s43_s15, [#allocation6], %s2335_s27, %s2335_s27, %s2336_s28  }
  0x35   :  { %s2281_s5 = scalar_lea.hbm %s2626_s3, 256 }
  0x36   :  { %p2282_p10 = scmp.ne.s32.totalorder %s2626_s3, %s2281_s5  ;;  %p2285_p11 = scmp.lt.u32.totalorder %s2281_s5, %s2626_s3 }
  0x38   :  { %p2287_p12 = pnand %p2285_p11, %p2282_p10 }
  0x3a   :  { %2290 = shalt.err (!%p2287_p12)
}
  0x3b   :  { %s2291_s10 = scalar_lea.vmem %s2402_s17, 256  ;;  %p2296_p0 = scmp.lt.s32.totalorder %s2402_s17, %s2402_s17 }
  0x3c   :  { %p2292_p13 = scmp.ne.s32.totalorder %s2402_s17, %s2291_s10  ;;  %p2297_p1 = scmp.lt.s32.totalorder %s2291_s10, %s2291_s10 }
  0x3e   :  { %p2298_p2 = por %p2297_p1, %p2296_p0 }
  0x40   :  { %p2299_p3 = pnand %p2298_p2, %p2292_p13 }
  0x42   :  { %2302 = shalt.err (!%p2299_p3)
}
  0x43   :  { %60 = dma.hbm_to_vmem [thread:$0]  %s2626_s3, 256, %s2402_s17, [#allocation9], %s2335_s27, %s2335_s27, %s2336_s28  }
  0x44   :  { %2325 = dma.done.wait [#allocation3], 256  }
  0x45   :  { %2326 = vsyncadd [#allocation3], 4294967040 }
  0x46   :  { %2327 = dma.done.wait [#allocation6], 8192  }
  0x47   :  { %2328 = vsyncadd [#allocation6], 4294959104 }
  0x48   :  { %2329 = dma.done.wait [#allocation9], 256  }
  0x49   :  { %2330 = vsyncadd [#allocation9], 4294967040  ;;  %v75_v0 = vlaneseq  ;;  %vm146_vm0 = vcmask 261120   ;;  %v310_v3 = vld [vmem:[#allocation5 + $0x80] sm:$0xff]  ;;  %v311_v4 = vld [vmem:[#allocation5 + $0x88] sm:$0xff]  ;;  %s2339_s3 = smov [#allocation10]  }
  0x4a   :  { %v312_v5 = vld [vmem:[#allocation5 + $0x90] sm:$0xff]  ;;  %v2048_v6 = vpack.c.bf16 %v311_v4, %v310_v3  ;;  %v313_v7 = vld [vmem:[#allocation5 + $0x98] sm:$0xff]  ;;  %v137_v12 = vld [vmem:[#allocation5 + $0x60] sm:$0xff]  ;;  %s1710_s12 = sshll.u32 %s2339_s3, 4  ;;  %s1711_s12 = int_to_ptr.vmem [resolvable:$true] %s1710_s12 }
  0x4b   :  { %v2439_v1 = vshrl.u32 %v75_v0, 7  ;;  %v2442_v8 = vld [vmem:[#allocation2] sm:$0xff]  ;;  %v2444_v9 = vld [vmem:[#allocation2 + $0x8] sm:$0xff]  ;;  %v2052_v11 = vpack.c.bf16 %v313_v7, %v312_v5  ;;  %v138_v13 = vld [vmem:[#allocation5 + $0x68] sm:$0xff]  ;;  %s2303_s1 = scalar_lea.vmem %s1711_s12, 256  ;;  %p2308_p5 = scmp.lt.s32.totalorder %s1711_s12, %s1711_s12 }
  0x4c   :  { %1886 = vmatprep.mubr.msk.f32.mxu1 %vm146_vm0, %v2442_v8  ;;  %v142_v14 = vld [vmem:[#allocation5 + $0x20] sm:$0xff]  ;;  %v118_v16 = vrot.slane %v2442_v8, 7  ;;  %v119_v17 = vrot.slane %v2444_v9, 7  ;;  %1864 = vmatprep.mubr.msk.f32.mxu0 %vm146_vm0, %v2442_v8  ;;  %v143_v18 = vld [vmem:[#allocation5 + $0x28] sm:$0xff]  ;;  %v144_v20 = vld [vmem:[#allocation5 + $0x30] sm:$0xff]  ;;  %v2056_v22 = vpack.c.bf16 %v138_v13, %v137_v12  ;;  %v125_v39 = vrot.slane %v2442_v8, 1  ;;  %p2304_p4 = scmp.ne.s32.totalorder %s1711_s12, %s2303_s1  ;;  %p2309_p6 = scmp.lt.s32.totalorder %s2303_s1, %s2303_s1 }
  0x4d   :  { %v82_v2 = vand.u32 7, %v2439_v1  ;;  %v2447_v10 = vadd.s32 8, %v2439_v1  ;;  %2049 = vmatprep.subr.bf16.mxu1 %v2048_v6  ;;  %vm120_vm1 = vcmp.lt.s32.totalorder %v2439_v1, 1  ;;  %v2032_v19 = vpack.c.bf16 %v143_v18, %v142_v14  ;;  %v145_v21 = vld [vmem:[#allocation5 + $0x38] sm:$0xff]  ;;  %v139_v23 = vld [vmem:[#allocation5 + $0x70] sm:$0xff]  ;;  %v132_v28 = vld [vmem:[#allocation5] sm:$0xff] }
  0x4e   :  { %2051 = vmatpush3.bf16.msra.mxu1 %v2048_v6  ;;  %v2036_v24 = vpack.c.bf16 %v145_v21, %v144_v20  ;;  %v140_v26 = vld [vmem:[#allocation5 + $0x78] sm:$0xff]  ;;  %v122_v27 = vsel %vm120_vm1, %v119_v17, %v118_v16  ;;  %v133_v29 = vld [vmem:[#allocation5 + $0x8] sm:$0xff]  ;;  %v134_v34 = vld [vmem:[#allocation5 + $0x10] sm:$0xff]  ;;  %v126_v40 = vrot.slane %v2444_v9, 1  ;;  %vm127_vm3 = vcmp.lt.s32.totalorder %v2439_v1, 7  ;;  %p2310_p7 = por %p2309_p6, %p2308_p5 }
  0x4f   :  { %v2451_v15 = vadd.s32 4294967295, %v82_v2  ;;  %2053 = vmatprep.subr.bf16.mxu1 %v2052_v11  ;;  %v89_v25 = vand.u32 7, %v2447_v10  ;;  %2033 = vmatprep.subr.bf16.mxu0 %v2032_v19  ;;  %v2060_v30 = vpack.c.bf16 %v140_v26, %v139_v23  ;;  %v2040_v33 = vpack.c.bf16 %v133_v29, %v132_v28  ;;  %v135_v35 = vld [vmem:[#allocation5 + $0x18] sm:$0xff]  ;;  %v553_v36 = vld [vmem:[#allocation5 + $0xa0] sm:$0xff]  ;;  %v554_v37 = vld [vmem:[#allocation5 + $0xa8] sm:$0xff] }
  0x50   :  { %2035 = vmatpush3.bf16.msra.mxu0 %v2032_v19  ;;  %v2466_v38 = vadd.s32 1, %v82_v2  ;;  %v2044_v41 = vpack.c.bf16 %v135_v35, %v134_v34  ;;  %v121_v42 = vsel %vm120_vm1, %v118_v16, %v119_v17  ;;  %v2072_v43 = vpack.c.bf16 %v554_v37, %v553_v36  ;;  %v555_v44 = vld [vmem:[#allocation5 + $0xb0] sm:$0xff]  ;;  %v556_v45 = vld [vmem:[#allocation5 + $0xb8] sm:$0xff]  ;;  %v465_v47 = vld [vmem:[#allocation5 + $0x40] sm:$0xff]  ;;  %p2311_p8 = pnand %p2310_p7, %p2304_p4 }
  0x51   :  { %vm104_vm2 = vcmp.ge.s32.totalorder %v2451_v15, 0  ;;  %2037 = vmatprep.subr.bf16.mxu0 %v2036_v24  ;;  %v2464_v32 = vadd.s32 4294967295, %v89_v25  ;;  %v128_v46 = vsel %vm127_vm3, %v125_v39, %v126_v40  ;;  %v466_v48 = vld [vmem:[#allocation5 + $0x48] sm:$0xff]  ;;  %v2076_v50 = vpack.c.bf16 %v556_v45, %v555_v44  ;;  %v467_v54 = vld [vmem:[#allocation5 + $0x50] sm:$0xff]  ;;  %v468_v55 = vld [vmem:[#allocation5 + $0x58] sm:$0xff] }
  0x52   :  { %2055 = vmatpush3.bf16.msra.mxu1 %v2052_v11  ;;  %v123_v31 = vsel %vm104_vm2, %v122_v27, 0.0  ;;  %vm114_vm5 = vcmp.lt.s32.totalorder %v2466_v38, 8  ;;  %v2487_v52 = vadd.s32 1, %v89_v25  ;;  %v2064_v53 = vpack.c.bf16 %v466_v48, %v465_v47  ;;  %v690_v26 = vld [vmem:[#allocation7] sm:$0xff]  ;;  %v692_v28 = vld [vmem:[#allocation7 + $0x10] sm:$0xff]  ;;  %v693_v29 = vld [vmem:[#allocation7 + $0x18] sm:$0xff] }
  0x53   :  { %2057 = vmatprep.subr.bf16.mxu1 %v2056_v22  ;;  %vm105_vm4 = vcmp.ge.s32.totalorder %v2464_v32, 0  ;;  %v130_v51 = vsel %vm114_vm5, %v128_v46, 0.0  ;;  %v2068_v56 = vpack.c.bf16 %v468_v55, %v467_v54  ;;  %v129_v57 = vsel %vm127_vm3, %v126_v40, %v125_v39 }
  0x54   :  { %2039 = vmatpush3.bf16.msra.mxu0 %v2036_v24  ;;  %v124_v49 = vsel %vm105_vm4, %v121_v42, 0.0  ;;  %vm115_vm6 = vcmp.lt.s32.totalorder %v2487_v52, 8  ;;  %v680_v42 = vsub.s32 0, %v2439_v1  ;;  %v686_v44 = vsub.s32 1, %v2439_v1 }
  0x55   :  { %1887 = vmatmul.mubr.msk.f32.vlgmr.msra.gmra.mrb[0].mxu1 %vm146_vm0, %v2444_v9  ;;  %2041 = vmatprep.subr.bf16.mxu0 %v2040_v33  ;;  %v131_v58 = vsel %vm115_vm6, %v129_v57, 0.0  ;;  %v785_v57 = vld [vmem:[#allocation7 + $0x38] sm:$0xff] }
  0x56   :  { %2059 = vmatpush3.bf16.msra.mxu1 %v2056_v22  ;;  %1897 = vmatprep.mubr.msk.f32.mxu1 %vm146_vm0, %v123_v31 }
  0x57   :  { %2061 = vmatprep.subr.bf16.mxu1 %v2060_v30  ;;  %1865 = vmatmul.mubr.msk.f32.vlgmr.msra.gmra.mrb[0].mxu0 %vm146_vm0, %v2444_v9 }
  0x58   :  { %2043 = vmatpush3.bf16.msra.mxu0 %v2040_v33  ;;  %1875 = vmatprep.mubr.msk.f32.mxu0 %vm146_vm0, %v123_v31  ;;  %v782_v31 = vld [vmem:[#allocation7 + $0x20] sm:$0xff]  ;;  %v783_v33 = vld [vmem:[#allocation7 + $0x28] sm:$0xff] }
  0x59   :  { %2045 = vmatprep.subr.bf16.mxu0 %v2044_v41  ;;  %v2088_v34 = vpack.c.bf16 %v783_v33, %v782_v31  ;;  %v936_v31 = vld [vmem:[#allocation5 + $0xf0] sm:$0xff]  ;;  %v937_v33 = vld [vmem:[#allocation5 + $0xf8] sm:$0xff] }
  0x5a   :  { %2063 = vmatpush3.bf16.msra.mxu1 %v2060_v30  ;;  %v2084_v30 = vpack.c.bf16 %v693_v29, %v692_v28  ;;  %v1102_v29 = vld [vmem:[#allocation5 + $0x148] sm:$0xff] }
  0x5b   :  { %2073 = vmatprep.subr.bf16.mxu1 %v2072_v43 }
  0x5c   :  { %2047 = vmatpush3.bf16.msra.mxu0 %v2044_v41 }
  0x5d   :  { %1898 = vmatmul.mubr.msk.f32.vlgmr.msra.gmra.mrb[0].mxu1 %vm146_vm0, %v124_v49  ;;  %2065 = vmatprep.subr.bf16.mxu0 %v2064_v53 }
  0x5e   :  { %2075 = vmatpush3.bf16.msra.mxu1 %v2072_v43  ;;  %1919 = vmatprep.mubr.msk.f32.mxu1 %vm146_vm0, %v130_v51  ;;  %v2507_v43 = vld [vmem:[#allocation8] sm:$0xff] }
  0x5f   :  { %2077 = vmatprep.subr.bf16.mxu1 %v2076_v50  ;;  %1876 = vmatmul.mubr.msk.f32.vlgmr.msra.gmra.mrb[0].mxu0 %vm146_vm0, %v124_v49  ;;  %v681_v45 = vrot.slane %v2507_v43, %v680_v42  ;;  %v687_v48 = vrot.slane %v2507_v43, %v686_v44 }
  0x60   :  { %2067 = vmatpush3.bf16.msra.mxu0 %v2064_v53  ;;  %1908 = vmatprep.mubr.msk.f32.mxu0 %vm146_vm0, %v130_v51 }
  0x61   :  { %2069 = vmatprep.subr.bf16.mxu0 %v2068_v56 }
  0x62   :  { %2079 = vmatpush3.bf16.msra.mxu1 %v2076_v50 }
  0x63   :  { %2089 = vmatprep.subr.bf16.mxu1 %v2088_v34 }
  0x64   :  { %2071 = vmatpush3.bf16.msra.mxu0 %v2068_v56  ;;  %v784_v56 = vld [vmem:[#allocation7 + $0x30] sm:$0xff] }
  0x65   :  { %1920 = vmatmul.mubr.msk.f32.vlgmr.msra.gmra.mrb[0].mxu1 %vm146_vm0, %v131_v58 }
  0x66   :  { %2091 = vmatpush3.bf16.msra.mxu1 %v2088_v34  ;;  %v1103_v34 = vld [vmem:[#allocation5 + $0x150] sm:$0xff] }
  0x67   :  { %1909 = vmatmul.mubr.msk.f32.vlgmr.msra.gmra.mrb[0].mxu0 %vm146_vm0, %v131_v58  ;;  %v2092_v58 = vpack.c.bf16 %v785_v57, %v784_v56  ;;  %v907_v56 = vsub.s32 5, %v2439_v1 }
  0x69   :  { %2093 = vmatprep.subr.bf16.mxu1 %v2092_v58 }
  0x6a   :  { %2095 = vmatpush3.bf16.msra.mxu1 %v2092_v58 }
 0x138   :  { %v1921_v59 = vpop.f32.mrb[0].mxu1 }
 0x139   :  { %v1737_v60 = vmul.f32 -1.442695, %v1921_v59  ;;  %v623_v61 = vpop.f32.mrb[1].mxu1  ;;  %v696_v59 = vsub.s32 2, %v2439_v1 }
 0x13a   :  { %v1736_v62 = vmul.f32 -1.442695, %v623_v61  ;;  %v1910_v63 = vpop.f32.mrb[0].mxu0 }
 0x13b   :  { %2183 = vpow2.f32 %v1737_v60  ;;  %v541_v0 = vpop.f32.mrb[1].mxu0  ;;  %v697_v60 = vrot.slane %v2507_v43, %v696_v59 }
 0x13c   :  { %2185 = vpow2.f32 %v1736_v62 }
 0x145   :  { %v2184_v2 = vpop.eup %2183 }
 0x146   :  { %v2186_v3 = vpop.eup %2185  ;;  %v641_v4 = vadd.f32 1.0, %v2184_v2 }
 0x147   :  { %v640_v5 = vadd.f32 1.0, %v2186_v3 }
 0x148   :  { %2187 = vrcp.f32 %v641_v4  ;;  %v788_v4 = vsub.s32 3, %v2439_v1 }
 0x149   :  { %2189 = vrcp.f32 %v640_v5 }
 0x14a   :  { %v789_v5 = vrot.slane %v2507_v43, %v788_v4 }
 0x152   :  { %v2188_v6 = vpop.eup %2187 }
 0x153   :  { %v2190_v7 = vpop.eup %2189  ;;  %v647_v10 = vmul.f32 %v2188_v6, %v1910_v63 }
 0x154   :  { %v646_v11 = vmul.f32 %v2190_v7, %v541_v0 }
 0x155   :  { %v650_v14 = vadd.f32 %v647_v10, %v2444_v9  ;;  %v691_v9 = vld [vmem:[#allocation7 + $0x8] sm:$0xff] }
 0x156   :  { %v649_v12 = vadd.f32 %v646_v11, %v2442_v8  ;;  %v2080_v27 = vpack.c.bf16 %v691_v9, %v690_v26  ;;  %v934_v26 = vld [vmem:[#allocation5 + $0xe0] sm:$0xff]  ;;  %v935_v9 = vld [vmem:[#allocation5 + $0xe8] sm:$0xff] }
 0x157   :  { %v654_v16 = vsel %vm146_vm0, %v650_v14, 0.0  ;;  %v2096_v28 = vpack.c.bf16 %v935_v9, %v934_v26  ;;  %v1259_v9 = vld [vmem:[#allocation5 + $0x118] sm:$0xff] }
 0x158   :  { %v651_v13 = vsel %vm146_vm0, %v649_v12, 0.0  ;;  %2081 = vmatprep.subr.bf16.mxu0 %v2080_v27 }
 0x159   :  { %652 = vadd.xlane.f32.xlu0 %v651_v13  ;;  %2083 = vmatpush3.bf16.msra.mxu0 %v2080_v27  ;;  %v1101_v27 = vld [vmem:[#allocation5 + $0x140] sm:$0xff] }
 0x15a   :  { %2085 = vmatprep.subr.bf16.mxu0 %v2084_v30 }
 0x15d   :  { %655 = vadd.xlane.f32.xlu0 %v654_v16  ;;  %2087 = vmatpush3.bf16.msra.mxu0 %v2084_v30  ;;  %v2112_v30 = vpack.c.bf16 %v1102_v29, %v1101_v27  ;;  %v1346_v27 = vld [vmem:[#allocation5 + $0x170] sm:$0xff] }
 0x15e   :  { %2097 = vmatprep.subr.bf16.mxu0 %v2096_v28 }
 0x15f   :  { %2113 = vmatprep.subr.bf16.mxu1 %v2112_v30 }
 0x1e6   :  { %v653_v17 = vpop.xlane.xlu0 %652 }
 0x1e7   :  { %v658_v18 = vmul.f32 0.03125, %v653_v17 }
 0x1e9   :  { %v660_v19 = vsub.f32 %v649_v12, %v658_v18 }
 0x1ea   :  { %v656_v20 = vpop.xlane.xlu0 %655 }
 0x1eb   :  { %v659_v21 = vmul.f32 0.03125, %v656_v20  ;;  %v662_v22 = vmul.f32 %v660_v19, %v660_v19 }
 0x1ed   :  { %v661_v23 = vsub.f32 %v650_v14, %v659_v21  ;;  %v664_v24 = vsel %vm146_vm0, %v662_v22, 0.0 }
 0x1ee   :  { %665 = vadd.xlane.f32.xlu1 %v664_v24 }
 0x1ef   :  { %v663_v25 = vmul.f32 %v661_v23, %v661_v23 }
 0x1f1   :  { %v667_v8 = vsel %vm146_vm0, %v663_v25, 0.0 }
 0x1f2   :  { %668 = vadd.xlane.f32.xlu1 %v667_v8 }
 0x27b   :  { %v666_v35 = vpop.xlane.xlu1 %665 }
 0x27c   :  { %v670_v36 = vmul.f32 0.03125, %v666_v35  ;;  %v2100_v35 = vpack.c.bf16 %v937_v33, %v936_v31 }
 0x27e   :  { %v672_v37 = vadd.f32 1e-05, %v670_v36  ;;  %v1104_v36 = vld [vmem:[#allocation5 + $0x158] sm:$0xff] }
 0x27f   :  { %v669_v39 = vpop.xlane.xlu1 %668 }
 0x280   :  { %2191 = vrsqrt.f32 %v672_v37  ;;  %v671_v40 = vmul.f32 0.03125, %v669_v39  ;;  %v2116_v37 = vpack.c.bf16 %v1104_v36, %v1103_v34  ;;  %v924_v39 = vld [vmem:[#allocation5 + $0xc0] sm:$0xff] }
 0x282   :  { %v673_v41 = vadd.f32 1e-05, %v671_v40  ;;  %v925_v40 = vld [vmem:[#allocation5 + $0xc8] sm:$0xff] }
 0x284   :  { %2193 = vrsqrt.f32 %v673_v41  ;;  %v929_v41 = vld [vmem:[#allocation5 + $0x120] sm:$0xff] }
 0x28a   :  { %v2192_v46 = vpop.eup %2191 }
 0x28b   :  { %v676_v47 = vmul.f32 %v2192_v46, %v660_v19  ;;  %v930_v46 = vld [vmem:[#allocation5 + $0x128] sm:$0xff] }
 0x28d   :  { %v682_v49 = vmul.f32 %v681_v45, %v676_v47  ;;  %v2120_v47 = vpack.c.bf16 %v930_v46, %v929_v41 }
 0x28e   :  { %v2194_v50 = vpop.eup %2193 }
 0x28f   :  { %v677_v51 = vmul.f32 %v2194_v50, %v661_v23  ;;  %v688_v53 = vadd.f32 %v687_v48, %v682_v49 }
 0x291   :  { %v683_v54 = vmul.f32 %v681_v45, %v677_v51  ;;  %1930 = vmatprep.mubr.msk.f32.mxu0 %vm146_vm0, %v688_v53  ;;  %v2104_v45 = vpack.c.bf16 %v925_v40, %v924_v39 }
 0x293   :  { %v689_v55 = vadd.f32 %v687_v48, %v683_v54 }
 0x295   :  { %1931 = vmatmul.mubr.msk.f32.vlgmr.msra.gmra.mrb[2].mxu0 %vm146_vm0, %v689_v55 }
 0x296   :  { %2099 = vmatpush3.bf16.msra.mxu0 %v2096_v28  ;;  %v1347_v28 = vld [vmem:[#allocation5 + $0x178] sm:$0xff] }
 0x297   :  { %2101 = vmatprep.subr.bf16.mxu0 %v2100_v35  ;;  %v2140_v31 = vpack.c.bf16 %v1347_v28, %v1346_v27 }
 0x29a   :  { %2103 = vmatpush3.bf16.msra.mxu0 %v2100_v35 }
 0x29b   :  { %2105 = vmatprep.subr.bf16.mxu0 %v2104_v45 }
 0x368   :  { %v1932_v61 = vpop.f32.mrb[2].mxu0 }
 0x369   :  { %v776_v62 = vadd.f32 %v1932_v61, %v697_v60  ;;  %v770_v63 = vpop.f32.mrb[3].mxu0 }
 0x36a   :  { %v771_v0 = vadd.f32 %v770_v63, %v697_v60 }
 0x36b   :  { %v780_v3 = vmax.f32 %v776_v62, 0.0  ;;  %v908_v62 = vrot.slane %v2507_v43, %v907_v56 }
 0x36c   :  { %v779_v2 = vmax.f32 %v771_v0, 0.0 }
 0x36e   :  { %1941 = vmatprep.mubr.msk.f32.mxu1 %vm146_vm0, %v779_v2  ;;  %v926_v2 = vld [vmem:[#allocation5 + $0xd0] sm:$0xff] }
 0x36f   :  { %1942 = vmatmul.mubr.msk.f32.vlgmr.msra.gmra.mrb[2].mxu1 %vm146_vm0, %v780_v3 }
 0x370   :  { %2115 = vmatpush3.bf16.msra.mxu1 %v2112_v30 }
 0x371   :  { %2117 = vmatprep.subr.bf16.mxu1 %v2116_v37 }
 0x374   :  { %2119 = vmatpush3.bf16.msra.mxu1 %v2116_v37 }
 0x375   :  { %2121 = vmatprep.subr.bf16.mxu1 %v2120_v47 }
 0x442   :  { %v1943_v6 = vpop.f32.mrb[2].mxu1 }
 0x443   :  { %v868_v7 = vadd.f32 %v1943_v6, %v789_v5  ;;  %v862_v10 = vpop.f32.mrb[3].mxu1  ;;  %v931_v6 = vld [vmem:[#allocation5 + $0x130] sm:$0xff] }
 0x444   :  { %v863_v11 = vadd.f32 %v862_v10, %v789_v5  ;;  %v927_v5 = vld [vmem:[#allocation5 + $0xd8] sm:$0xff] }
 0x445   :  { %v872_v12 = vadd.f32 %v868_v7, %v689_v55  ;;  %v901_v55 = vsub.s32 4, %v2439_v1  ;;  %v932_v7 = vld [vmem:[#allocation5 + $0x138] sm:$0xff] }
 0x446   :  { %v871_v13 = vadd.f32 %v863_v11, %v688_v53 }
 0x447   :  { %v876_v14 = vsel %vm146_vm0, %v872_v12, 0.0  ;;  %v902_v57 = vrot.slane %v2507_v43, %v901_v55 }
 0x448   :  { %877 = vadd.xlane.f32.xlu1 %v876_v14  ;;  %v873_v16 = vsel %vm146_vm0, %v871_v13, 0.0  ;;  %v2124_v14 = vpack.c.bf16 %v932_v7, %v931_v6  ;;  %v1482_v7 = vld [vmem:[#allocation7 + $0x40] sm:$0xff] }
 0x449   :  { %874 = vadd.xlane.f32.xlu0 %v873_v16  ;;  %v1256_v16 = vld [vmem:[#allocation5 + $0x100] sm:$0xff] }
 0x4d5   :  { %v878_v17 = vpop.xlane.xlu1 %877 }
 0x4d6   :  { %v880_v18 = vmul.f32 0.03125, %v878_v17  ;;  %v875_v19 = vpop.xlane.xlu0 %874  ;;  %v1257_v17 = vld [vmem:[#allocation5 + $0x108] sm:$0xff] }
 0x4d7   :  { %v879_v20 = vmul.f32 0.03125, %v875_v19  ;;  %v1345_v19 = vld [vmem:[#allocation5 + $0x168] sm:$0xff] }
 0x4d8   :  { %v882_v21 = vsub.f32 %v872_v12, %v880_v18  ;;  %v1344_v18 = vld [vmem:[#allocation5 + $0x160] sm:$0xff] }
 0x4d9   :  { %v881_v22 = vsub.f32 %v871_v13, %v879_v20  ;;  %v2108_v13 = vpack.c.bf16 %v927_v5, %v926_v2 }
 0x4da   :  { %v884_v23 = vmul.f32 %v882_v21, %v882_v21 }
 0x4db   :  { %v883_v24 = vmul.f32 %v881_v22, %v881_v22 }
 0x4dc   :  { %v888_v25 = vsel %vm146_vm0, %v884_v23, 0.0 }
 0x4dd   :  { %889 = vadd.xlane.f32.xlu1 %v888_v25  ;;  %v885_v8 = vsel %vm146_vm0, %v883_v24, 0.0  ;;  %v2128_v24 = vpack.c.bf16 %v1257_v17, %v1256_v16  ;;  %v2136_v25 = vpack.c.bf16 %v1345_v19, %v1344_v18  ;;  %v1574_v16 = vld [vmem:[#allocation7 + $0x60] sm:$0xff] }
 0x4de   :  { %886 = vadd.xlane.f32.xlu0 %v885_v8  ;;  %v1258_v8 = vld [vmem:[#allocation5 + $0x110] sm:$0xff] }
 0x4df   :  { %v2132_v30 = vpack.c.bf16 %v1259_v9, %v1258_v8 }
 0x56a   :  { %v890_v48 = vpop.xlane.xlu1 %889 }
 0x56b   :  { %v892_v49 = vmul.f32 0.03125, %v890_v48  ;;  %v887_v50 = vpop.xlane.xlu0 %886 }
 0x56c   :  { %v891_v51 = vmul.f32 0.03125, %v887_v50 }
 0x56d   :  { %v894_v53 = vadd.f32 1e-05, %v892_v49 }
 0x56e   :  { %v893_v54 = vadd.f32 1e-05, %v891_v51 }
 0x56f   :  { %2195 = vrsqrt.f32 %v894_v53 }
 0x570   :  { %2197 = vrsqrt.f32 %v893_v54 }
 0x579   :  { %v2196_v58 = vpop.eup %2195 }
 0x57a   :  { %v2198_v60 = vpop.eup %2197  ;;  %v898_v61 = vmul.f32 %v2196_v58, %v882_v21 }
 0x57b   :  { %v897_v63 = vmul.f32 %v2198_v60, %v881_v22 }
 0x57c   :  { %v904_v0 = vmul.f32 %v902_v57, %v898_v61 }
 0x57d   :  { %v903_v3 = vmul.f32 %v902_v57, %v897_v63 }
 0x57e   :  { %v2540_v10 = vadd.f32 %v908_v62, %v904_v0 }
 0x57f   :  { %v2542_v11 = vadd.f32 %v908_v62, %v903_v3 }
 0x580   :  { %v912_v12 = vrot.slane %v2540_v10, 7  ;;  %v918_v22 = vrot.slane %v2540_v10, 1 }
 0x581   :  { %1952 = vmatprep.mubr.msk.f32.mxu0 %vm146_vm0, %v2542_v11  ;;  %1974 = vmatprep.mubr.msk.f32.mxu1 %vm146_vm0, %v2542_v11  ;;  %v911_v43 = vrot.slane %v2542_v11, 7  ;;  %v917_v21 = vrot.slane %v2542_v11, 1 }
 0x582   :  { %1953 = vmatmul.mubr.msk.f32.vlgmr.msra.gmra.mrb[4].mxu0 %vm146_vm0, %v2540_v10  ;;  %1975 = vmatmul.mubr.msk.f32.vlgmr.msra.gmra.mrb[4].mxu1 %vm146_vm0, %v2540_v10 }
 0x583   :  { %2107 = vmatpush3.bf16.msra.mxu0 %v2104_v45  ;;  %2123 = vmatpush3.bf16.msra.mxu1 %v2120_v47  ;;  %v914_v20 = vsel %vm120_vm1, %v912_v12, %v911_v43  ;;  %v913_v26 = vsel %vm120_vm1, %v911_v43, %v912_v12  ;;  %v919_v15 = vsel %vm127_vm3, %v917_v21, %v918_v22  ;;  %v1484_v12 = vld [vmem:[#allocation7 + $0x50] sm:$0xff]  ;;  %v1575_v43 = vld [vmem:[#allocation7 + $0x68] sm:$0xff] }
 0x584   :  { %v915_v23 = vsel %vm104_vm2, %v914_v20, 0.0  ;;  %2109 = vmatprep.subr.bf16.mxu0 %v2108_v13  ;;  %2125 = vmatprep.subr.bf16.mxu1 %v2124_v14  ;;  %v916_v29 = vsel %vm105_vm4, %v913_v26, 0.0  ;;  %v921_v33 = vsel %vm114_vm5, %v919_v15, 0.0  ;;  %v920_v32 = vsel %vm127_vm3, %v918_v22, %v917_v21 }
 0x585   :  { %1963 = vmatprep.mubr.msk.f32.mxu0 %vm146_vm0, %v915_v23  ;;  %1985 = vmatprep.mubr.msk.f32.mxu1 %vm146_vm0, %v915_v23  ;;  %v922_v34 = vsel %vm115_vm6, %v920_v32, 0.0  ;;  %v2152_v17 = vpack.c.bf16 %v1575_v43, %v1574_v16  ;;  %v1577_v32 = vld [vmem:[#allocation7 + $0x78] sm:$0xff] }
 0x587   :  { %2111 = vmatpush3.bf16.msra.mxu0 %v2108_v13  ;;  %2127 = vmatpush3.bf16.msra.mxu1 %v2124_v14  ;;  %v1485_v13 = vld [vmem:[#allocation7 + $0x58] sm:$0xff] }
 0x588   :  { %2129 = vmatprep.subr.bf16.mxu0 %v2128_v24  ;;  %2137 = vmatprep.subr.bf16.mxu1 %v2136_v25  ;;  %v2148_v14 = vpack.c.bf16 %v1485_v13, %v1484_v12 }
 0x58a   :  { %1964 = vmatmul.mubr.msk.f32.vlgmr.msra.gmra.mrb[4].mxu0 %vm146_vm0, %v916_v29  ;;  %1986 = vmatmul.mubr.msk.f32.vlgmr.msra.gmra.mrb[4].mxu1 %vm146_vm0, %v916_v29 }
 0x58b   :  { %2131 = vmatpush3.bf16.msra.mxu0 %v2128_v24  ;;  %1996 = vmatprep.mubr.msk.f32.mxu0 %vm146_vm0, %v921_v33  ;;  %v1440_v24 = vld [vmem:[#allocation8 + $0x8] sm:$0xff] }
 0x58c   :  { %2139 = vmatpush3.bf16.msra.mxu1 %v2136_v25  ;;  %2007 = vmatprep.mubr.msk.f32.mxu1 %vm146_vm0, %v921_v33  ;;  %v1472_v25 = vrot.slane %v1440_v24, %v680_v42  ;;  %v1478_v28 = vrot.slane %v1440_v24, %v686_v44  ;;  %v1576_v33 = vld [vmem:[#allocation7 + $0x70] sm:$0xff]  ;;  %v1489_v42 = vrot.slane %v1440_v24, %v696_v59 }
 0x58d   :  { %2133 = vmatprep.subr.bf16.mxu0 %v2132_v30  ;;  %2141 = vmatprep.subr.bf16.mxu1 %v2140_v31  ;;  %v1700_v13 = vrot.slane %v1440_v24, %v907_v56 }
 0x58f   :  { %2135 = vmatpush3.bf16.msra.mxu0 %v2132_v30 }
 0x590   :  { %2143 = vmatpush3.bf16.msra.mxu1 %v2140_v31 }
 0x591   :  { %2153 = vmatprep.subr.bf16.mxu1 %v2152_v17 }
 0x592   :  { %1997 = vmatmul.mubr.msk.f32.vlgmr.msra.gmra.mrb[4].mxu0 %vm146_vm0, %v922_v34 }
 0x593   :  { %2008 = vmatmul.mubr.msk.f32.vlgmr.msra.gmra.mrb[4].mxu1 %vm146_vm0, %v922_v34  ;;  %v2156_v34 = vpack.c.bf16 %v1577_v32, %v1576_v33 }
 0x594   :  { %2155 = vmatpush3.bf16.msra.mxu1 %v2152_v17 }
 0x595   :  { %2157 = vmatprep.subr.bf16.mxu1 %v2156_v34 }
 0x598   :  { %2159 = vmatpush3.bf16.msra.mxu1 %v2156_v34 }
 0x665   :  { %v1998_v38 = vpop.f32.mrb[4].mxu0 }
 0x666   :  { %v2009_v35 = vpop.f32.mrb[4].mxu1  ;;  %v1332_v36 = vpop.f32.mrb[5].mxu0 }
 0x667   :  { %v1755_v37 = vmul.f32 -1.442695, %v2009_v35  ;;  %v1414_v39 = vpop.f32.mrb[5].mxu1 }
 0x668   :  { %v1754_v40 = vmul.f32 -1.442695, %v1414_v39 }
 0x669   :  { %2199 = vpow2.f32 %v1755_v37 }
 0x66a   :  { %2201 = vpow2.f32 %v1754_v40  ;;  %v1581_v40 = vrot.slane %v1440_v24, %v788_v4 }
 0x673   :  { %v2200_v41 = vpop.eup %2199 }
 0x674   :  { %v2202_v45 = vpop.eup %2201  ;;  %v1432_v46 = vadd.f32 1.0, %v2200_v41 }
 0x675   :  { %v1431_v47 = vadd.f32 1.0, %v2202_v45 }
 0x676   :  { %2203 = vrcp.f32 %v1432_v46 }
 0x677   :  { %2205 = vrcp.f32 %v1431_v47 }
 0x680   :  { %v2204_v52 = vpop.eup %2203 }
 0x681   :  { %v2206_v48 = vpop.eup %2205  ;;  %v1438_v49 = vmul.f32 %v2204_v52, %v1998_v38 }
 0x682   :  { %v1437_v50 = vmul.f32 %v2206_v48, %v1332_v36 }
 0x683   :  { %v1442_v51 = vadd.f32 %v1438_v49, %v2540_v10  ;;  %v1483_v10 = vld [vmem:[#allocation7 + $0x48] sm:$0xff] }
 0x684   :  { %v1441_v53 = vadd.f32 %v1437_v50, %v2542_v11  ;;  %v2144_v11 = vpack.c.bf16 %v1483_v10, %v1482_v7  ;;  %v1694_v7 = vrot.slane %v1440_v24, %v901_v55 }
 0x685   :  { %v1446_v54 = vsel %vm146_vm0, %v1442_v51, 0.0 }
 0x686   :  { %1447 = vadd.xlane.f32.xlu1 %v1446_v54  ;;  %v1443_v57 = vsel %vm146_vm0, %v1441_v53, 0.0  ;;  %2145 = vmatprep.subr.bf16.mxu0 %v2144_v11 }
 0x687   :  { %1444 = vadd.xlane.f32.xlu0 %v1443_v57  ;;  %2147 = vmatpush3.bf16.msra.mxu0 %v2144_v11 }
 0x688   :  { %2149 = vmatprep.subr.bf16.mxu0 %v2148_v14 }
 0x68b   :  { %2151 = vmatpush3.bf16.msra.mxu0 %v2148_v14 }
 0x713   :  { %v1448_v58 = vpop.xlane.xlu1 %1447 }
 0x714   :  { %v1450_v60 = vmul.f32 0.03125, %v1448_v58  ;;  %v1445_v61 = vpop.xlane.xlu0 %1444 }
 0x715   :  { %v1449_v62 = vmul.f32 0.03125, %v1445_v61 }
 0x716   :  { %v1452_v63 = vsub.f32 %v1442_v51, %v1450_v60 }
 0x717   :  { %v1451_v0 = vsub.f32 %v1441_v53, %v1449_v62 }
 0x718   :  { %v1454_v2 = vmul.f32 %v1452_v63, %v1452_v63 }
 0x719   :  { %v1453_v3 = vmul.f32 %v1451_v0, %v1451_v0 }
 0x71a   :  { %v1458_v5 = vsel %vm146_vm0, %v1454_v2, 0.0 }
 0x71b   :  { %1459 = vadd.xlane.f32.xlu1 %v1458_v5  ;;  %v1455_v6 = vsel %vm146_vm0, %v1453_v3, 0.0 }
 0x71c   :  { %1456 = vadd.xlane.f32.xlu0 %v1455_v6 }
 0x7a8   :  { %v1460_v18 = vpop.xlane.xlu1 %1459 }
 0x7a9   :  { %v1462_v19 = vmul.f32 0.03125, %v1460_v18  ;;  %v1457_v20 = vpop.xlane.xlu0 %1456 }
 0x7aa   :  { %v1461_v21 = vmul.f32 0.03125, %v1457_v20 }
 0x7ab   :  { %v1464_v22 = vadd.f32 1e-05, %v1462_v19 }
 0x7ac   :  { %v1463_v23 = vadd.f32 1e-05, %v1461_v21 }
 0x7ad   :  { %2207 = vrsqrt.f32 %v1464_v22 }
 0x7ae   :  { %2209 = vrsqrt.f32 %v1463_v23 }
 0x7b7   :  { %v2208_v8 = vpop.eup %2207 }
 0x7b8   :  { %v2210_v26 = vpop.eup %2209  ;;  %v1468_v9 = vmul.f32 %v2208_v8, %v1452_v63 }
 0x7b9   :  { %v1467_v27 = vmul.f32 %v2210_v26, %v1451_v0 }
 0x7ba   :  { %v1474_v15 = vmul.f32 %v1472_v25, %v1468_v9 }
 0x7bb   :  { %v1473_v29 = vmul.f32 %v1472_v25, %v1467_v27 }
 0x7bc   :  { %v1480_v31 = vadd.f32 %v1478_v28, %v1474_v15 }
 0x7bd   :  { %v1479_v30 = vadd.f32 %v1478_v28, %v1473_v29 }
 0x7bf   :  { %2018 = vmatprep.mubr.msk.f32.mxu0 %vm146_vm0, %v1479_v30 }
 0x7c0   :  { %2019 = vmatmul.mubr.msk.f32.vlgmr.msra.gmra.mrb[6].mxu0 %vm146_vm0, %v1480_v31 }
 0x893   :  { %v2020_v38 = vpop.f32.mrb[6].mxu0 }
 0x894   :  { %v1568_v35 = vadd.f32 %v2020_v38, %v1489_v42  ;;  %v1562_v36 = vpop.f32.mrb[7].mxu0 }
 0x895   :  { %v1563_v44 = vadd.f32 %v1562_v36, %v1489_v42 }
 0x896   :  { %v1572_v39 = vmax.f32 %v1568_v35, 0.0 }
 0x897   :  { %v1571_v37 = vmax.f32 %v1563_v44, 0.0 }
 0x899   :  { %2029 = vmatprep.mubr.msk.f32.mxu1 %vm146_vm0, %v1571_v37 }
 0x89a   :  { %2030 = vmatmul.mubr.msk.f32.vlgmr.msra.gmra.mrb[6].mxu1 %vm146_vm0, %v1572_v39 }
 0x96d   :  { %v2031_v41 = vpop.f32.mrb[6].mxu1 }
 0x96e   :  { %v1660_v45 = vadd.f32 %v2031_v41, %v1581_v40  ;;  %v1654_v46 = vpop.f32.mrb[7].mxu1 }
 0x96f   :  { %v1655_v47 = vadd.f32 %v1654_v46, %v1581_v40 }
 0x970   :  { %v1664_v52 = vadd.f32 %v1660_v45, %v1480_v31 }
 0x971   :  { %v1663_v48 = vadd.f32 %v1655_v47, %v1479_v30 }
 0x972   :  { %v1668_v59 = vsel %vm146_vm0, %v1664_v52, 0.0 }
 0x973   :  { %1669 = vadd.xlane.f32.xlu1 %v1668_v59  ;;  %v1665_v49 = vsel %vm146_vm0, %v1663_v48, 0.0 }
 0x974   :  { %1666 = vadd.xlane.f32.xlu0 %v1665_v49 }
 0xa00   :  { %v1670_v50 = vpop.xlane.xlu1 %1669 }
 0xa01   :  { %v1672_v51 = vmul.f32 0.03125, %v1670_v50  ;;  %v1667_v53 = vpop.xlane.xlu0 %1666 }
 0xa02   :  { %v1671_v54 = vmul.f32 0.03125, %v1667_v53 }
 0xa03   :  { %v1674_v57 = vsub.f32 %v1664_v52, %v1672_v51 }
 0xa04   :  { %v1673_v58 = vsub.f32 %v1663_v48, %v1671_v54 }
 0xa05   :  { %v1676_v60 = vmul.f32 %v1674_v57, %v1674_v57 }
 0xa06   :  { %v1675_v4 = vmul.f32 %v1673_v58, %v1673_v58 }
 0xa07   :  { %v1680_v61 = vsel %vm146_vm0, %v1676_v60, 0.0 }
 0xa08   :  { %1681 = vadd.xlane.f32.xlu1 %v1680_v61  ;;  %v1677_v62 = vsel %vm146_vm0, %v1675_v4, 0.0 }
 0xa09   :  { %1678 = vadd.xlane.f32.xlu0 %v1677_v62 }
 0xa95   :  { %v1682_v63 = vpop.xlane.xlu1 %1681 }
 0xa96   :  { %v1684_v0 = vmul.f32 0.03125, %v1682_v63  ;;  %v1679_v2 = vpop.xlane.xlu0 %1678 }
 0xa97   :  { %v1683_v3 = vmul.f32 0.03125, %v1679_v2 }
 0xa98   :  { %v1686_v5 = vadd.f32 1e-05, %v1684_v0 }
 0xa99   :  { %v1685_v6 = vadd.f32 1e-05, %v1683_v3 }
 0xa9a   :  { %2211 = vrsqrt.f32 %v1686_v5 }
 0xa9b   :  { %2213 = vrsqrt.f32 %v1685_v6 }
 0xaa4   :  { %v2212_v10 = vpop.eup %2211 }
 0xaa5   :  { %v2214_v11 = vpop.eup %2213  ;;  %v1690_v12 = vmul.f32 %v2212_v10, %v1674_v57 }
 0xaa6   :  { %v1689_v14 = vmul.f32 %v2214_v11, %v1673_v58 }
 0xaa7   :  { %v1696_v16 = vmul.f32 %v1694_v7, %v1690_v12 }
 0xaa8   :  { %v1695_v43 = vmul.f32 %v1694_v7, %v1689_v14 }
 0xaa9   :  { %v1702_v17 = vadd.f32 %v1700_v13, %v1696_v16 }
 0xaaa   :  { %v1701_v18 = vadd.f32 %v1700_v13, %v1695_v43 }
 0xaab   :  { %1704 = vst.msk [vmem:[#allocation10 + $0x8] sm:$0xff] %vm146_vm0, %v1702_v17 }
 0xaac   :  { %1703 = vst.msk [vmem:[#allocation10] sm:$0xff] %vm146_vm0, %v1701_v18 }
 0xaad   :  { %2314 = shalt.err (!%p2311_p8)
}
 0xaae   :  { %s2315_s15 = scalar_lea.hbm %s2627_s4, 256 }
 0xaaf   :  { %p2316_p9 = scmp.ne.s32.totalorder %s2627_s4, %s2315_s15  ;;  %p2319_p10 = scmp.lt.u32.totalorder %s2315_s15, %s2627_s4 }
 0xab1   :  { %p2321_p11 = pnand %p2319_p10, %p2316_p9 }
 0xab3   :  { %2324 = shalt.err (!%p2321_p11)
}
 0xab4   :  { %1716 = dma.vmem_to_hbm [thread:$0]  %s1711_s12, 256, %s2627_s4, [#allocation4], %s2335_s27, %s2335_s27, %s2336_s28  }
 0xab5   :  { %2331 = dma.done.wait [#allocation4], 256  }
 0xab6   :  { %2332 = vsyncadd [#allocation4], 4294967040 }
 0xab7   :  { %1720 = vsyncpa [#allocation3], 1 }
 0xab8   :  { %1721 = vsyncpa [#allocation6], 1 }
 0xab9   :  { %1722 = vsyncpa [#allocation9], 1 }
 0xaba   :  { %1723 = vsyncpa [#allocation4], 1 }

</bundles_post_ra>
